<compile_context>
chip_gen: v5e
topology: v5e:2x2
jax: 0.10.0
libtpu: 0.0.40
codegen_flags: <defaults>
</compile_context>

<pallas_src>
import numpy as np
import jax
import jax.numpy as jnp
from jax.experimental import pallas as pl
from jax.experimental.pallas import tpu as pltpu


# ----------------------------- Pallas kernel ------------------------------- #
def layer_scale_kernel(x_ref, g_ref, o_ref):
    # x_ref: (TM, D2) tile, g_ref: (1, D2) broadcast row, o_ref: (TM, D2) tile.
    # Pure VPU elementwise multiply; g broadcasts over the sublane axis.
    o_ref[...] = x_ref[...] * g_ref[...]


# ----------------------------- wrapper ------------------------------------- #
def layer_scale(x, gamma):
    """out = x * gamma, gamma broadcast over the last dim of x."""
    orig_shape = x.shape
    D = int(gamma.shape[-1])
    assert orig_shape[-1] == D, "last dim of x must equal gamma dim"

    # Flatten all leading dims into rows: (M, D).
    M = 1
    for s in orig_shape[:-1]:
        M *= int(s)
    x2 = x.reshape(M, D)
    g2 = gamma.reshape(1, D).astype(x.dtype)

    # Lane-dense re-layout: if D underfills the 128-lane vreg, fold whole rows
    # into the lane dim (free row-major reshape in the wrapper) and tile gamma
    # to match, so stores are unmasked full-lane vst (not vst.msk).
    r = 1
    if D < 128 and M > 1:
        r = min(M, max(1, 1024 // D))   # aim for >= 1024 lanes-worth per row
        while r > 1 and M % r != 0:
            r -= 1
    M2, D2 = M // r, D * r
    x2 = x2.reshape(M2, D2)
    if r > 1:
        g2 = jnp.tile(g2, (1, r))       # (1, D2)

    # Sublane alignment for the row-tile: f32 -> 8, bf16 -> 16, 8-bit -> 32.
    itemsize = jnp.dtype(x.dtype).itemsize
    sub = 8 * max(1, 4 // max(1, itemsize))

    # Biggest row-tile that keeps double-buffered (2x in + 2x out) tiles within
    # a conservative VMEM budget.
    vmem_budget = 16 * 1024 * 1024                   # bytes for pipelined tiles
    tm = max(1, vmem_budget // (4 * D2 * itemsize))
    if tm >= M2:
        tm = M2                                      # whole array in one block
    else:
        tm = max(sub, (tm // sub) * sub)             # sublane-aligned tile

    grid = (pl.cdiv(M2, tm),)

    out2 = pl.pallas_call(
        layer_scale_kernel,
        out_shape=jax.ShapeDtypeStruct((M2, D2), x.dtype),
        grid=grid,
        in_specs=[
            pl.BlockSpec((tm, D2), lambda i: (i, 0)),
            pl.BlockSpec((1, D2), lambda i: (0, 0)),   # gamma: same block every step
        ],
        out_specs=pl.BlockSpec((tm, D2), lambda i: (i, 0)),
        compiler_params=pltpu.CompilerParams(
            dimension_semantics=("parallel",),         # shard rows across TCs
            vmem_limit_bytes=32 * 1024 * 1024),
    )(x2, g2)

    return out2.reshape(orig_shape)


# ----------------------------- plain-JAX reference ------------------------- #
def layer_scale_reference(x, gamma):
    return x * gamma


if __name__ == "__main__":
    key = jax.random.PRNGKey(0)
    kx, kg, kx4 = jax.random.split(key, 3)

    # Shapes implied by the module: (batch, seq, dim) tokens scaled per-feature.
    B, N, D = 2, 8, 32
    x = jax.random.normal(kx, (B, N, D), dtype=jnp.float32)

    # nn.Parameter init is init_values * ones(dim); perturb it (as if trained)
    # so the per-channel broadcast is actually exercised numerically.
    init_values = 1e-5
    gamma = (init_values * jnp.ones((D,), jnp.float32)
             + 0.01 * jax.random.normal(kg, (D,), dtype=jnp.float32))

    out = jax.block_until_ready(layer_scale(x, gamma))
    ref = layer_scale_reference(x, gamma)
    np.testing.assert_allclose(np.asarray(out), np.asarray(ref),
                               rtol=1e-6, atol=1e-6)

    # Higher-rank input (batch, channels, spatial, dim) — same broadcast rule.
    x4 = jax.random.normal(kx4, (2, 4, 16, D), dtype=jnp.float32)
    out4 = jax.block_until_ready(layer_scale(x4, gamma))
    np.testing.assert_allclose(np.asarray(out4),
                               np.asarray(layer_scale_reference(x4, gamma)),
                               rtol=1e-6, atol=1e-6)

    print("KERNEL_OK")
</pallas_src>

<mosaic_0001>
module attributes {stable_mosaic.version = 11 : i64} {
  func.func @layer_scale_kernel(%arg0: i32, %arg1: memref<1x512xf32, #tpu.memory_space<vmem>>, %arg2: memref<1x512xf32, #tpu.memory_space<vmem>>, %arg3: memref<1x512xf32, #tpu.memory_space<vmem>>) attributes {dimension_semantics = [#tpu.dimension_semantics<parallel>], iteration_bounds = array<i64: 1>, scalar_prefetch = 0 : i64, scratch_operands = 0 : i64, tpu.core_type = #tpu.core_type<tc>, window_params = [{transform_indices = @transform_0, window_bounds = array<i64: 1, 512>}, {pipeline_mode = #tpu.pipeline_mode<synchronous>, transform_indices = @transform_1, window_bounds = array<i64: 1, 512>}, {transform_indices = @transform_2, window_bounds = array<i64: 1, 512>}]} {
    %c0 = arith.constant 0 : index
    %c0_0 = arith.constant 0 : index
    %0 = vector.load %arg1[%c0, %c0_0] : memref<1x512xf32, #tpu.memory_space<vmem>>, vector<1x512xf32>
    %c0_1 = arith.constant 0 : index
    %c0_2 = arith.constant 0 : index
    %1 = vector.load %arg2[%c0_1, %c0_2] : memref<1x512xf32, #tpu.memory_space<vmem>>, vector<1x512xf32>
    %2 = arith.mulf %0, %1 : vector<1x512xf32>
    %c0_3 = arith.constant 0 : index
    %c0_4 = arith.constant 0 : index
    %3 = vector.load %arg3[%c0_3, %c0_4] : memref<1x512xf32, #tpu.memory_space<vmem>>, vector<1x512xf32>
    tpu.vector_store %arg3[%c0_3, %c0_4], %2 {strides = array<i32>} : memref<1x512xf32, #tpu.memory_space<vmem>>, vector<1x512xf32>,
    return
  }
  func.func @transform_0(%arg0: i32) -> (i32, i32) {
    %c0_i32 = arith.constant 0 : i32
    %c0_i32_0 = arith.constant 0 : i32
    return %arg0, %c0_i32 : i32, i32
  }
  func.func @transform_1(%arg0: i32) -> (i32, i32) {
    %c0_i32 = arith.constant 0 : i32
    %c0_i32_0 = arith.constant 0 : i32
    %c0_i32_1 = arith.constant 0 : i32
    return %c0_i32, %c0_i32_0 : i32, i32
  }
  func.func @transform_2(%arg0: i32) -> (i32, i32) {
    %c0_i32 = arith.constant 0 : i32
    %c0_i32_0 = arith.constant 0 : i32
    return %arg0, %c0_i32 : i32, i32
  }
}

</mosaic_0001>

<bundles_post_ra>
// kernel: tpu_custom_call.1
= control target key start
LH: loop header
LB: loop body
LE: loop exit
PB: predicated region body
PF: predicated region fallthrough
CT: control target
= control target key end

     0   :  { %7 = vsyncpa [#allocation3], 0  ;;  %s174_s0 = inlined_call_operand.hbm [shape: f32[1,512], index: 0, kind: input, shape index: {}]   ;;  %s175_s1 = inlined_call_operand.hbm [shape: f32[1,512], index: 1, kind: input, shape index: {}]   ;;  %s176_s2 = inlined_call_operand.hbm [shape: f32[1,512], index: 2, kind: output, shape index: {}]  }
   0x1   :  { %8 = vsyncpa [#allocation6], 0 }
   0x2   :  { %9 = vsyncpa [#allocation4], 0  ;;  %s15_s11 = sshll.u32 %s174_s0, 4  ;;  %s147_s12 = smov [#allocation2]   ;;  %s16_s11 = int_to_ptr.hbm [resolvable:$true] %s15_s11 }
   0x3   :  { %s17_s13 = sshll.u32 %s147_s12, 4  ;;  %s26_s16 = sshll.u32 %s175_s1, 4  ;;  %s18_s13 = int_to_ptr.vmem [resolvable:$true] %s17_s13  ;;  %s27_s16 = int_to_ptr.hbm [resolvable:$true] %s26_s16 }
   0x4   :  { %20 = dma.hbm_to_vmem [thread:$0]  %s16_s11, 64, %s18_s13, [#allocation3]  }
   0x5   :  { %s148_s17 = smov [#allocation5]  }
   0x6   :  { %s28_s18 = sshll.u32 %s148_s17, 4  ;;  %s29_s18 = int_to_ptr.vmem [resolvable:$true] %s28_s18 }
   0x7   :  { %31 = dma.hbm_to_vmem [thread:$0]  %s27_s16, 64, %s29_s18, [#allocation6]  }
   0x8   :  { %141 = dma.done.wait [#allocation3], 64  }
   0x9   :  { %142 = vsyncadd [#allocation3], 4294967232 }
   0xa   :  { %143 = dma.done.wait [#allocation6], 64  }
   0xb   :  { %144 = vsyncadd [#allocation6], 4294967232  ;;  %v43_v0 = vlaneseq  ;;  %s149_s0 = smov [#allocation7]   ;;  %s55_s22 = sshll.u32 %s176_s2, 4  ;;  %v40_v1 = vld [vmem:[#allocation2] sm:$0xf]  ;;  %s56_s22 = int_to_ptr.hbm [resolvable:$true] %s55_s22 }
   0xc   :  { %s53_s19 = sshll.u32 %s149_s0, 4  ;;  %v41_v2 = vld [vmem:[#allocation5] sm:$0xf]  ;;  %s54_s19 = int_to_ptr.vmem [resolvable:$true] %s53_s19 }
   0xd   :  { %vm45_vm0 = vcmp.lt.s32.totalorder %v43_v0, 512  ;;  %v42_v3 = vmul.f32 %v41_v2, %v40_v1 }
   0xf   :  { %47 = vst.msk [vmem:[#allocation7] sm:$0xf] %vm45_vm0, %v42_v3 }
  0x10   :  { %58 = dma.vmem_to_hbm [thread:$0]  %s54_s19, 64, %s56_s22, [#allocation4]  }
  0x11   :  { %145 = dma.done.wait [#allocation4], 64  }
  0x12   :  { %146 = vsyncadd [#allocation4], 4294967232 }
  0x13   :  { %63 = vsyncpa [#allocation3], 1 }
  0x14   :  { %64 = vsyncpa [#allocation6], 1 }
  0x15   :  { %65 = vsyncpa [#allocation4], 1 }

</bundles_post_ra>
